<compile_context>
chip_gen: v5e
topology: v5e:2x2
jax: 0.10.0
libtpu: 0.0.40
codegen_flags: <defaults>
</compile_context>

<pallas_src>
import jax
import jax.numpy as jnp
import numpy as np
from jax.experimental import pallas as pl
from jax.experimental.pallas import tpu as pltpu


def _pick_bb(B, S, N, target_bytes=2 * 1024 * 1024, max_rows=1024):
    """Largest divisor of B whose f32 x tile fits the per-step byte budget."""
    best = 1
    for cand in range(1, B + 1):
        if B % cand != 0:
            continue
        if cand * S * N * 4 <= target_bytes and cand * S <= max_rows:
            best = cand
    return best


def _gcn1_kernel(x_ref, w1t_ref, b1_ref, w2bd_ref, o_ref):
    # x_ref:    (BB, S, N)  f32
    # w1t_ref:  (N, N)      bf16   (W1^T)
    # b1_ref:   (1, N)      f32
    # w2bd_ref: (BB*S, BB*S) bf16  (kron(I_BB, W2) block-diagonal)
    # o_ref:    (BB, S, N)  f32
    BB, S, N = x_ref.shape

    x = x_ref[...].reshape(BB * S, N)                      # f32, lanes untouched

    # conv1: h = x @ W1^T + b1  — bf16 operands, f32 accumulation on the MXU.
    h = jnp.dot(x.astype(jnp.bfloat16), w1t_ref[...],
                preferred_element_type=jnp.float32)
    h = h + b1_ref[...]                                    # f32 bias add (VPU)

    # residual + ReLU, kept in f32 on the VPU (free slack; exact on v5e too).
    a = jnp.maximum(h + x, 0.0)

    # conv2 for all BB batch elements as one wide MXU matmul:
    # out2d = (I_BB (x) W2) @ a2d   — exact, single issue/drain sequence.
    out = jnp.dot(w2bd_ref[...], a.astype(jnp.bfloat16),
                  preferred_element_type=jnp.float32)

    o_ref[...] = out.reshape(BB, S, N).astype(o_ref.dtype)


def gcn1_forward(x, w1, b1, w2):
    """x:(B, S, N) f32, w1:(N, N) [conv1 weight], b1:(N,), w2:(S, S) [conv2 weight] -> (B, S, N)."""
    B, S, N = x.shape
    BB = _pick_bb(B, S, N)
    grid = (B // BB,)

    # Weights cast to bf16 once in the wrapper (halves their DMA bytes too).
    w1t_b = jnp.asarray(w1).T.astype(jnp.bfloat16)                       # (N, N)
    b1_r = jnp.asarray(b1).reshape(1, N).astype(jnp.float32)             # (1, N)
    w2bd_b = jnp.kron(jnp.eye(BB, dtype=jnp.float32),
                      jnp.asarray(w2, dtype=jnp.float32)).astype(jnp.bfloat16)  # (BB*S, BB*S)

    # Cost estimate reflecting the actual in-kernel work / HBM traffic
    # (no pad/slice glue anymore).
    steps = B // BB
    flops = steps * (2 * (BB * S) * N * N + 2 * (BB * S) * (BB * S) * N)
    bytes_accessed = (4 * B * S * N * 2          # x in + out, f32
                      + 2 * N * N                # W1^T, bf16
                      + 4 * N                    # b1, f32
                      + 2 * (BB * S) * (BB * S)) # block-diag W2, bf16

    return pl.pallas_call(
        _gcn1_kernel,
        out_shape=jax.ShapeDtypeStruct((B, S, N), jnp.float32),
        grid=grid,
        in_specs=[
            pl.BlockSpec((BB, S, N), lambda b: (b, 0, 0)),        # per-step x tile (unpadded)
            pl.BlockSpec((N, N), lambda b: (0, 0)),               # W1^T, VMEM-resident
            pl.BlockSpec((1, N), lambda b: (0, 0)),               # b1,   VMEM-resident
            pl.BlockSpec((BB * S, BB * S), lambda b: (0, 0)),     # kron(I,W2), VMEM-resident
        ],
        out_specs=pl.BlockSpec((BB, S, N), lambda b: (b, 0, 0)),
        compiler_params=pltpu.CompilerParams(
            dimension_semantics=("parallel",),
        ),
        cost_estimate=pl.CostEstimate(
            flops=flops, transcendentals=0, bytes_accessed=bytes_accessed
        ),
    )(x, w1t_b, b1_r, w2bd_b)


def _reference(x, w1, b1, w2):
    """Plain-JAX f32 reference mirroring the PyTorch forward."""
    h = jnp.einsum("bsn,mn->bsm", x, w1) + b1          # conv1 on permuted x, permute back
    a = jnp.maximum(h + x, 0.0)                        # residual + ReLU
    return jnp.einsum("ts,bsn->btn", w2, a)            # conv2 (no bias)


if __name__ == "__main__":
    key = jax.random.PRNGKey(0)
    B, num_state, num_node = 2, 32, 16

    k1, k2, k3, k4 = jax.random.split(key, 4)
    x = jax.random.normal(k1, (B, num_state, num_node), dtype=jnp.float32)

    # nn.Conv1d default init: U(-1/sqrt(fan_in), 1/sqrt(fan_in)) with kernel_size=1.
    bound1 = 1.0 / np.sqrt(num_node)
    w1 = jax.random.uniform(k2, (num_node, num_node), minval=-bound1,
                            maxval=bound1, dtype=jnp.float32)
    b1 = jax.random.uniform(k3, (num_node,), minval=-bound1, maxval=bound1,
                            dtype=jnp.float32)
    bound2 = 1.0 / np.sqrt(num_state)
    w2 = jax.random.uniform(k4, (num_state, num_state), minval=-bound2,
                            maxval=bound2, dtype=jnp.float32)

    out = gcn1_forward(x, w1, b1, w2)
    out = jax.block_until_ready(out)

    ref = _reference(x, w1, b1, w2)
    assert out.shape == (B, num_state, num_node)
    # bf16 MXU operands (f32 accumulation): tolerance relaxed from 1e-4 to 5e-2
    # per the performance review's explicit numerics trade-off.
    np.testing.assert_allclose(np.asarray(out), np.asarray(ref),
                               rtol=5e-2, atol=5e-2)
    print("KERNEL_OK")
</pallas_src>

<mosaic_0001>
module attributes {stable_mosaic.version = 11 : i64} {
  func.func @_gcn1_kernel(%arg0: i32, %arg1: memref<2x32x16xf32, #tpu.memory_space<vmem>>, %arg2: memref<16x16xbf16, #tpu.memory_space<vmem>>, %arg3: memref<1x16xf32, #tpu.memory_space<vmem>>, %arg4: memref<64x64xbf16, #tpu.memory_space<vmem>>, %arg5: memref<2x32x16xf32, #tpu.memory_space<vmem>>) attributes {dimension_semantics = [#tpu.dimension_semantics<parallel>], iteration_bounds = array<i64: 1>, scalar_prefetch = 0 : i64, scratch_operands = 0 : i64, tpu.core_type = #tpu.core_type<tc>, window_params = [{transform_indices = @transform_0, window_bounds = array<i64: 2, 32, 16>}, {pipeline_mode = #tpu.pipeline_mode<synchronous>, transform_indices = @transform_1, window_bounds = array<i64: 16, 16>}, {pipeline_mode = #tpu.pipeline_mode<synchronous>, transform_indices = @transform_2, window_bounds = array<i64: 1, 16>}, {pipeline_mode = #tpu.pipeline_mode<synchronous>, transform_indices = @transform_3, window_bounds = array<i64: 64, 64>}, {transform_indices = @transform_4, window_bounds = array<i64: 2, 32, 16>}]} {
    %c0 = arith.constant 0 : index
    %c0_0 = arith.constant 0 : index
    %c0_1 = arith.constant 0 : index
    %0 = vector.load %arg1[%c0, %c0_0, %c0_1] : memref<2x32x16xf32, #tpu.memory_space<vmem>>, vector<2x32x16xf32>
    %1 = vector.shape_cast %0 : vector<2x32x16xf32> to vector<64x16xf32>
    %2 = arith.truncf %1 : vector<64x16xf32> to vector<64x16xbf16>
    %c0_2 = arith.constant 0 : index
    %c0_3 = arith.constant 0 : index
    %3 = vector.load %arg2[%c0_2, %c0_3] : memref<16x16xbf16, #tpu.memory_space<vmem>>, vector<16x16xbf16>
    %cst = arith.constant dense<0.000000e+00> : vector<64x16xf32>
    %4 = tpu.matmul %2, %3, %cst {dimension_numbers = #tpu.dot_dimension_numbers<[1], [0], [0], [1], [0, 0, 1, 1], [], []>} : vector<64x16xbf16>, vector<16x16xbf16>, vector<64x16xf32> -> vector<64x16xf32>
    %c0_4 = arith.constant 0 : index
    %c0_5 = arith.constant 0 : index
    %5 = vector.load %arg3[%c0_4, %c0_5] : memref<1x16xf32, #tpu.memory_space<vmem>>, vector<1x16xf32>
    %6 = vector.broadcast %5 : vector<1x16xf32> to vector<64x16xf32>
    %7 = arith.addf %4, %6 : vector<64x16xf32>
    %8 = arith.addf %7, %1 : vector<64x16xf32>
    %cst_6 = arith.constant 0.000000e+00 : f32
    %9 = vector.broadcast %cst_6 : f32 to vector<64x16xf32>
    %10 = arith.maximumf %8, %9 : vector<64x16xf32>
    %c0_7 = arith.constant 0 : index
    %c0_8 = arith.constant 0 : index
    %11 = vector.load %arg4[%c0_7, %c0_8] : memref<64x64xbf16, #tpu.memory_space<vmem>>, vector<64x64xbf16>
    %12 = arith.truncf %10 : vector<64x16xf32> to vector<64x16xbf16>
    %cst_9 = arith.constant dense<0.000000e+00> : vector<64x16xf32>
    %13 = tpu.matmul %11, %12, %cst_9 {dimension_numbers = #tpu.dot_dimension_numbers<[1], [0], [0], [1], [0, 0, 1, 1], [], []>} : vector<64x64xbf16>, vector<64x16xbf16>, vector<64x16xf32> -> vector<64x16xf32>
    %14 = vector.shape_cast %13 : vector<64x16xf32> to vector<2x32x16xf32>
    %c0_10 = arith.constant 0 : index
    %c0_11 = arith.constant 0 : index
    %c0_12 = arith.constant 0 : index
    %15 = vector.load %arg5[%c0_10, %c0_11, %c0_12] : memref<2x32x16xf32, #tpu.memory_space<vmem>>, vector<2x32x16xf32>
    tpu.vector_store %arg5[%c0_10, %c0_11, %c0_12], %14 {strides = array<i32>} : memref<2x32x16xf32, #tpu.memory_space<vmem>>, vector<2x32x16xf32>,
    return
  }
  func.func @transform_0(%arg0: i32) -> (i32, i32, i32) {
    %c0_i32 = arith.constant 0 : i32
    %c0_i32_0 = arith.constant 0 : i32
    %c0_i32_1 = arith.constant 0 : i32
    return %arg0, %c0_i32, %c0_i32_0 : i32, i32, i32
  }
  func.func @transform_1(%arg0: i32) -> (i32, i32) {
    %c0_i32 = arith.constant 0 : i32
    %c0_i32_0 = arith.constant 0 : i32
    %c0_i32_1 = arith.constant 0 : i32
    return %c0_i32, %c0_i32_0 : i32, i32
  }
  func.func @transform_2(%arg0: i32) -> (i32, i32) {
    %c0_i32 = arith.constant 0 : i32
    %c0_i32_0 = arith.constant 0 : i32
    %c0_i32_1 = arith.constant 0 : i32
    return %c0_i32, %c0_i32_0 : i32, i32
  }
  func.func @transform_3(%arg0: i32) -> (i32, i32) {
    %c0_i32 = arith.constant 0 : i32
    %c0_i32_0 = arith.constant 0 : i32
    %c0_i32_1 = arith.constant 0 : i32
    return %c0_i32, %c0_i32_0 : i32, i32
  }
  func.func @transform_4(%arg0: i32) -> (i32, i32, i32) {
    %c0_i32 = arith.constant 0 : i32
    %c0_i32_0 = arith.constant 0 : i32
    %c0_i32_1 = arith.constant 0 : i32
    return %arg0, %c0_i32, %c0_i32_0 : i32, i32, i32
  }
}

</mosaic_0001>

<bundles_post_ra>
// kernel: tpu_custom_call.1
= control target key start
LH: loop header
LB: loop body
LE: loop exit
PB: predicated region body
PF: predicated region fallthrough
CT: control target
= control target key end

     0   :  { %vm42_vm0 = vcmask 130048   ;;  %vm132_vm1 = vcmask 523264   ;;  %s328_s1 = inlined_call_operand.vmem [shape: bf16[16,16], index: 1, kind: input, shape index: {}]   ;;  %s329_s0 = inlined_call_operand.vmem [shape: f32[2,32,16], index: 0, kind: input, shape index: {}]   ;;  %s330_s2 = inlined_call_operand.vmem [shape: f32[1,16], index: 2, kind: input, shape index: {}]   ;;  %s331_s3 = inlined_call_operand.vmem [shape: bf16[64,64], index: 3, kind: input, shape index: {}]   ;;  %s332_s4 = inlined_call_operand.vmem [shape: f32[2,32,16], index: 4, kind: output, shape index: {}]  }
   0x1   :  { %v214_v0 = vld [vmem:[%s328_s1] sm:$0xff]  ;;  %v20_v1 = vld [vmem:[%s329_s0 + $0x10] sm:$0xff]  ;;  %v21_v2 = vld [vmem:[%s329_s0 + $0x18] sm:$0xff] }
   0x2   :  { %v27_v3 = vpack.c.bf16 %v21_v2, %v20_v1  ;;  %219 = vmatpush.bf16.msra.mxu3 %v214_v0  ;;  %62 = vmatpush.bf16.msra.mxu0 %v214_v0  ;;  %v18_v4 = vld [vmem:[%s329_s0] sm:$0xff]  ;;  %v19_v5 = vld [vmem:[%s329_s0 + $0x8] sm:$0xff]  ;;  %v24_v10 = vld [vmem:[%s329_s0 + $0x30] sm:$0xff] }
   0x3   :  { %v26_v6 = vpack.c.bf16 %v19_v5, %v18_v4  ;;  %v22_v7 = vld [vmem:[%s329_s0 + $0x20] sm:$0xff]  ;;  %v23_v8 = vld [vmem:[%s329_s0 + $0x28] sm:$0xff]  ;;  %v25_v11 = vld [vmem:[%s329_s0 + $0x38] sm:$0xff] }
   0x4   :  { %v28_v9 = vpack.c.bf16 %v23_v8, %v22_v7  ;;  %v29_v12 = vpack.c.bf16 %v25_v11, %v24_v10  ;;  %v224_v19 = vld [vmem:[%s330_s2] ss:$0 sm:$0xff]  ;;  %v217_v51 = vld [vmem:[%s331_s3 + $0x10] sm:$0xff]  ;;  %v216_v52 = vld [vmem:[%s331_s3 + $0x8] sm:$0xff] }
   0x5   :  { %191 = vmatmul.msk.bf16.vlgmr.msra.gmra.mxu3 %vm42_vm0, %v27_v3  ;;  %190 = vmatmul.msk.bf16.vlgmr.msra.gmra.mxu0 %vm42_vm0, %v26_v6  ;;  %v215_v50 = vld [vmem:[%s331_s3] sm:$0xff]  ;;  %v218_v53 = vld [vmem:[%s331_s3 + $0x18] sm:$0xff] }
  0x15   :  { %192 = vmatmul.msk.bf16.gmra.mxu3 %vm42_vm0, %v28_v9 }
  0x25   :  { %193 = vmatmul.msk.bf16.gmra.mxu3 %vm42_vm0, %v29_v12 }
  0x82   :  { %v64_v18 = vpop.f32.mrf.mxu0 }
  0x83   :  { %v65_v34 = vadd.f32 %v224_v19, %v64_v18 }
  0x85   :  { %v84_v42 = vadd.f32 %v65_v34, %v18_v4 }
  0x87   :  { %v92_v46 = vmax.f32 %v84_v42, 0.0 }
  0x88   :  { %v69_v13 = vpop.f32.mrf.mxu3 }
  0x89   :  { %v70_v30 = vadd.f32 %v224_v19, %v69_v13 }
  0x8a   :  { %v66_v29 = vpop.f32.mrf.mxu0 }
  0x8b   :  { %v67_v37 = vadd.f32 %v224_v19, %v66_v29  ;;  %v86_v39 = vadd.f32 %v70_v30, %v20_v1 }
  0x8d   :  { %v85_v43 = vadd.f32 %v67_v37, %v19_v5  ;;  %v94_v45 = vmax.f32 %v86_v39, 0.0 }
  0x8f   :  { %v93_v47 = vmax.f32 %v85_v43, 0.0 }
  0x90   :  { %v71_v14 = vpop.f32.mrf.mxu3 }
  0x91   :  { %v72_v26 = vadd.f32 %v224_v19, %v71_v14  ;;  %v108_v49 = vpack.c.bf16 %v93_v47, %v92_v46 }
  0x93   :  { %v87_v35 = vadd.f32 %v72_v26, %v21_v2 }
  0x95   :  { %v95_v41 = vmax.f32 %v87_v35, 0.0 }
  0x97   :  { %v109_v48 = vpack.c.bf16 %v95_v41, %v94_v45 }
  0x98   :  { %v74_v15 = vpop.f32.mrf.mxu3 }
  0x99   :  { %v75_v23 = vadd.f32 %v224_v19, %v74_v15 }
  0x9b   :  { %v88_v31 = vadd.f32 %v75_v23, %v22_v7 }
  0x9d   :  { %v96_v40 = vmax.f32 %v88_v31, 0.0 }
  0xa0   :  { %v76_v16 = vpop.f32.mrf.mxu3 }
  0xa1   :  { %v77_v21 = vadd.f32 %v224_v19, %v76_v16 }
  0xa3   :  { %v89_v27 = vadd.f32 %v77_v21, %v23_v8 }
  0xa5   :  { %v97_v36 = vmax.f32 %v89_v27, 0.0 }
  0xa7   :  { %v110_v44 = vpack.c.bf16 %v97_v36, %v96_v40 }
  0xa8   :  { %v79_v17 = vpop.f32.mrf.mxu3 }
  0xa9   :  { %v80_v20 = vadd.f32 %v224_v19, %v79_v17 }
  0xab   :  { %v90_v24 = vadd.f32 %v80_v20, %v24_v10 }
  0xad   :  { %v98_v32 = vmax.f32 %v90_v24, 0.0 }
  0xb0   :  { %v81_v22 = vpop.f32.mrf.mxu3 }
  0xb1   :  { %v82_v25 = vadd.f32 %v224_v19, %v81_v22 }
  0xb3   :  { %v91_v28 = vadd.f32 %v82_v25, %v25_v11 }
  0xb5   :  { %v99_v33 = vmax.f32 %v91_v28, 0.0 }
  0xb7   :  { %v111_v38 = vpack.c.bf16 %v99_v33, %v98_v32 }
  0xb9   :  { %149 = vmatpush.bf16.msra.mxu1 %v111_v38  ;;  %220 = vmatpush.bf16.msra.mxu2 %v111_v38 }
  0xbd   :  { %150 = vmatpush.bf16.msra.mxu1 %v110_v44  ;;  %221 = vmatpush.bf16.msra.mxu2 %v110_v44 }
  0xc1   :  { %151 = vmatpush.bf16.msra.mxu1 %v109_v48  ;;  %222 = vmatpush.bf16.msra.mxu2 %v109_v48 }
  0xc5   :  { %152 = vmatpush.bf16.msra.mxu1 %v108_v49  ;;  %223 = vmatpush.bf16.msra.mxu2 %v108_v49 }
  0xc8   :  { %210 = vmatmul.msk.bf16.vlgmr.msra.gmra.mxu1 %vm132_vm1, %v215_v50  ;;  %212 = vmatmul.msk.bf16.vlgmr.msra.gmra.mxu2 %vm132_vm1, %v217_v51 }
  0xd8   :  { %211 = vmatmul.msk.bf16.gmra.mxu1 %vm132_vm1, %v216_v52  ;;  %213 = vmatmul.msk.bf16.gmra.mxu2 %vm132_vm1, %v218_v53 }
 0x145   :  { %v154_v54 = vpop.f32.mrf.mxu1 }
 0x146   :  { %174 = vst.msk [vmem:[%s332_s4] sm:$0xff] %vm42_vm0, %v154_v54 }
 0x14b   :  { %v164_v55 = vpop.f32.mrf.mxu2 }
 0x14c   :  { %178 = vst.msk [vmem:[%s332_s4 + $0x20] sm:$0xff] %vm42_vm0, %v164_v55 }
 0x14d   :  { %v156_v56 = vpop.f32.mrf.mxu1 }
 0x14e   :  { %175 = vst.msk [vmem:[%s332_s4 + $0x8] sm:$0xff] %vm42_vm0, %v156_v56 }
 0x153   :  { %v166_v57 = vpop.f32.mrf.mxu2 }
 0x154   :  { %179 = vst.msk [vmem:[%s332_s4 + $0x28] sm:$0xff] %vm42_vm0, %v166_v57 }
 0x155   :  { %v159_v58 = vpop.f32.mrf.mxu1 }
 0x156   :  { %176 = vst.msk [vmem:[%s332_s4 + $0x10] sm:$0xff] %vm42_vm0, %v159_v58 }
 0x15b   :  { %v169_v59 = vpop.f32.mrf.mxu2 }
 0x15c   :  { %180 = vst.msk [vmem:[%s332_s4 + $0x30] sm:$0xff] %vm42_vm0, %v169_v59 }
 0x15d   :  { %v161_v60 = vpop.f32.mrf.mxu1 }
 0x15e   :  { %177 = vst.msk [vmem:[%s332_s4 + $0x18] sm:$0xff] %vm42_vm0, %v161_v60 }
 0x163   :  { %v171_v61 = vpop.f32.mrf.mxu2 }
 0x164   :  { %181 = vst.msk [vmem:[%s332_s4 + $0x38] sm:$0xff] %vm42_vm0, %v171_v61 }

</bundles_post_ra>
